<compile_context>
chip_gen: v7x
topology: tpu7x:2x2x1
jax: 0.10.0
libtpu: 0.0.40
codegen_flags: <defaults>
</compile_context>

<pallas_src>
import functools
import math

import jax
import jax.numpy as jnp
from jax.experimental import pallas as pl
from jax.experimental.pallas import tpu as pltpu


# ----------------------------- fused Pallas kernel ---------------------------

def _prenet_conv_kernel(
    x_ref,
    fc1_w_ref, fc1_b_ref,
    fc2_w_ref, fc2_b_ref,
    c1_w_ref, c1_b_ref, bn1_s_ref, bn1_t_ref,
    c2_w_ref, c2_b_ref, bn2_s_ref, bn2_t_ref,
    c3_w_ref, c3_b_ref, bn3_s_ref, bn3_t_ref,
    proj_w_ref, proj_b_ref,
    o_ref,
    *, batch, ksize,
):
    SB = x_ref.shape[0]          # S * B rows, flattened s-major
    pad = (ksize - 1) // 2

    # --- Prenet embed: two fused linear + relu (dropouts identity in eval) ---
    h = jnp.maximum(
        jnp.dot(x_ref[...], fc1_w_ref[...], preferred_element_type=jnp.float32)
        + fc1_b_ref[...], 0.0)
    h = jnp.maximum(
        jnp.dot(h, fc2_w_ref[...], preferred_element_type=jnp.float32)
        + fc2_b_ref[...], 0.0)

    # --- Conv1d(k, SAME) -> ReLU -> eval-mode BN, as one im2col matmul each ---
    def conv_relu_bn(h, w_ref, b_ref, s_ref, t_ref):
        C = h.shape[1]
        zpad = jnp.zeros((pad * batch, C), jnp.float32)
        hp = jnp.concatenate([zpad, h, zpad], axis=0)        # ((S+K-1)*B, C)
        # rows are (s, b) flattened s-major, so tap k == row offset k*batch;
        # batches never mix and the zero rows implement SAME padding.
        im2col = jnp.concatenate(
            [hp[k * batch:k * batch + SB, :] for k in range(ksize)], axis=1)
        y = (jnp.dot(im2col, w_ref[...], preferred_element_type=jnp.float32)
             + b_ref[...])
        y = jnp.maximum(y, 0.0)              # ReLU before BN (as in PyTorch)
        return y * s_ref[...] + t_ref[...]   # folded eval-mode BatchNorm1d

    h = conv_relu_bn(h, c1_w_ref, c1_b_ref, bn1_s_ref, bn1_t_ref)
    h = conv_relu_bn(h, c2_w_ref, c2_b_ref, bn2_s_ref, bn2_t_ref)
    h = conv_relu_bn(h, c3_w_ref, c3_b_ref, bn3_s_ref, bn3_t_ref)

    # --- projection linear ---
    o_ref[...] = (
        jnp.dot(h, proj_w_ref[...], preferred_element_type=jnp.float32)
        + proj_b_ref[...])


# ------------------------------ JAX wrapper ----------------------------------

def prenet_conv_forward(x, p):
    """x: (S, B, in_dim) float32 -> (S, B, num_hidden) float32."""
    S, B, Din = x.shape
    Hp = p["fc1_w"].shape[1]
    Cin = p["fc2_w"].shape[1]
    K = p["conv1_w"].shape[0]
    H = p["proj_w"].shape[1]
    SB = S * B

    # (S, B, Din) -> (S*B, Din): contiguous reshape, no transpose, no pad.
    x2d = x.reshape(SB, Din)

    def row(v):          # biases / BN params as (1, C) VMEM rows
        return v.reshape(1, -1)

    def conv_w(w):       # (K, Cin, Cout) -> (K*Cin, Cout); tap-major = im2col order
        k, c, o = w.shape
        return w.reshape(k * c, o)

    args = (
        x2d,
        p["fc1_w"], row(p["fc1_b"]),
        p["fc2_w"], row(p["fc2_b"]),
        conv_w(p["conv1_w"]), row(p["conv1_b"]), row(p["bn1_scale"]), row(p["bn1_shift"]),
        conv_w(p["conv2_w"]), row(p["conv2_b"]), row(p["bn2_scale"]), row(p["bn2_shift"]),
        conv_w(p["conv3_w"]), row(p["conv3_b"]), row(p["bn3_scale"]), row(p["bn3_shift"]),
        p["proj_w"], row(p["proj_b"]),
    )

    flops = 2 * SB * (Din * Hp + Hp * Cin + K * Cin * H + 2 * K * H * H + H * H)
    bytes_accessed = 4 * (sum(int(a.size) for a in args) + SB * H)

    vmem = pl.BlockSpec(memory_space=pltpu.MemorySpace.VMEM)  # whole array in VMEM
    out2d = pl.pallas_call(
        functools.partial(_prenet_conv_kernel, batch=B, ksize=K),
        out_shape=jax.ShapeDtypeStruct((SB, H), jnp.float32),
        in_specs=[vmem] * len(args),
        out_specs=vmem,
        cost_estimate=pl.CostEstimate(
            flops=flops, transcendentals=0, bytes_accessed=bytes_accessed),
    )(*args)
    return out2d.reshape(S, B, H)


# --------------------------- parameter construction --------------------------

def _xavier_uniform(key, shape, fan_in, fan_out, gain):
    bound = gain * math.sqrt(6.0 / (fan_in + fan_out))
    return jax.random.uniform(key, shape, jnp.float32, -bound, bound)


def _bias_uniform(key, shape, fan_in):
    bound = 1.0 / math.sqrt(fan_in)
    return jax.random.uniform(key, shape, jnp.float32, -bound, bound)


def make_params(key, input_size, prenet_hidden, in_size, num_hidden, ksize=5):
    gain_lin = 1.0
    gain_relu = math.sqrt(2.0)
    keys = jax.random.split(key, 16)
    p = {}
    # Prenet embed: Linear(input_size, prenet_hidden), Linear(prenet_hidden, in_size)
    p["fc1_w"] = _xavier_uniform(keys[0], (input_size, prenet_hidden),
                                 input_size, prenet_hidden, gain_lin)
    p["fc1_b"] = _bias_uniform(keys[1], (prenet_hidden,), input_size)
    p["fc2_w"] = _xavier_uniform(keys[2], (prenet_hidden, in_size),
                                 prenet_hidden, in_size, gain_lin)
    p["fc2_b"] = _bias_uniform(keys[3], (in_size,), prenet_hidden)
    # Convs (weights stored as (K, Cin, Cout)); xavier with relu gain,
    # fan_in = Cin*K, fan_out = Cout*K (PyTorch conv fan convention).
    cins = [in_size, num_hidden, num_hidden]
    for i, cin in enumerate(cins, start=1):
        p[f"conv{i}_w"] = _xavier_uniform(
            keys[3 + 2 * i], (ksize, cin, num_hidden),
            cin * ksize, num_hidden * ksize, gain_relu)
        p[f"conv{i}_b"] = _bias_uniform(keys[4 + 2 * i], (num_hidden,), cin * ksize)
        # BatchNorm1d eval-mode fold: gamma=1, beta=0, mean=0, var=1, eps=1e-5
        eps = 1e-5
        p[f"bn{i}_scale"] = jnp.full((num_hidden,), 1.0 / math.sqrt(1.0 + eps),
                                     jnp.float32)
        p[f"bn{i}_shift"] = jnp.zeros((num_hidden,), jnp.float32)
    # Projection Linear(num_hidden, num_hidden)
    p["proj_w"] = _xavier_uniform(keys[12], (num_hidden, num_hidden),
                                  num_hidden, num_hidden, gain_lin)
    p["proj_b"] = _bias_uniform(keys[13], (num_hidden,), num_hidden)
    return p


# ------------------------------ pure-JAX reference ---------------------------

def ref_forward(x, p):
    h = jnp.maximum(x @ p["fc1_w"] + p["fc1_b"], 0.0)
    h = jnp.maximum(h @ p["fc2_w"] + p["fc2_b"], 0.0)
    h = jnp.transpose(h, (1, 2, 0))  # (S,B,C) -> (B,C,S), PyTorch NCL
    for i in (1, 2, 3):
        w = jnp.transpose(p[f"conv{i}_w"], (2, 1, 0))  # (Cout, Cin, K)
        y = jax.lax.conv_general_dilated(
            h, w, window_strides=(1,), padding=[(2, 2)],
            dimension_numbers=("NCH", "OIH", "NCH"))
        y = y + p[f"conv{i}_b"][None, :, None]
        y = jnp.maximum(y, 0.0)
        y = y * p[f"bn{i}_scale"][None, :, None] + p[f"bn{i}_shift"][None, :, None]
        h = y
    h = jnp.transpose(h, (2, 0, 1))  # (B,C,S) -> (S,B,C)
    return h @ p["proj_w"] + p["proj_b"]


# ------------------------------------ main -----------------------------------

if __name__ == "__main__":
    S, B = 16, 2              # sequence length, batch
    input_size = 8            # Prenet input dim
    prenet_hidden = 16        # Prenet hidden dim
    in_size = 8               # Prenet output dim == conv1 in_channels
    num_hidden = 32           # conv / projection width

    key = jax.random.PRNGKey(0)
    kx, kp = jax.random.split(key)
    x = jax.random.normal(kx, (S, B, input_size), jnp.float32)
    params = make_params(kp, input_size, prenet_hidden, in_size, num_hidden)

    out = prenet_conv_forward(x, params)
    out = jax.block_until_ready(out)

    ref = jax.block_until_ready(ref_forward(x, params))
    assert out.shape == (S, B, num_hidden)
    assert float(jnp.max(jnp.abs(out - ref))) < 1e-4, "mismatch vs JAX reference"

    print("KERNEL_OK")
</pallas_src>

<mosaic_0001>
module attributes {stable_mosaic.version = 11 : i64} {
  func.func @_prenet_conv_kernel(%arg0: memref<32x8xf32, #tpu.memory_space<vmem>>, %arg1: memref<8x16xf32, #tpu.memory_space<vmem>>, %arg2: memref<1x16xf32, #tpu.memory_space<vmem>>, %arg3: memref<16x8xf32, #tpu.memory_space<vmem>>, %arg4: memref<1x8xf32, #tpu.memory_space<vmem>>, %arg5: memref<40x32xf32, #tpu.memory_space<vmem>>, %arg6: memref<1x32xf32, #tpu.memory_space<vmem>>, %arg7: memref<1x32xf32, #tpu.memory_space<vmem>>, %arg8: memref<1x32xf32, #tpu.memory_space<vmem>>, %arg9: memref<160x32xf32, #tpu.memory_space<vmem>>, %arg10: memref<1x32xf32, #tpu.memory_space<vmem>>, %arg11: memref<1x32xf32, #tpu.memory_space<vmem>>, %arg12: memref<1x32xf32, #tpu.memory_space<vmem>>, %arg13: memref<160x32xf32, #tpu.memory_space<vmem>>, %arg14: memref<1x32xf32, #tpu.memory_space<vmem>>, %arg15: memref<1x32xf32, #tpu.memory_space<vmem>>, %arg16: memref<1x32xf32, #tpu.memory_space<vmem>>, %arg17: memref<32x32xf32, #tpu.memory_space<vmem>>, %arg18: memref<1x32xf32, #tpu.memory_space<vmem>>, %arg19: memref<32x32xf32, #tpu.memory_space<vmem>>) attributes {dimension_semantics = [], scalar_prefetch = 0 : i64, scratch_operands = 0 : i64, tpu.core_type = #tpu.core_type<tc>} {
    %c0 = arith.constant 0 : index
    %c0_0 = arith.constant 0 : index
    %0 = vector.load %arg0[%c0, %c0_0] : memref<32x8xf32, #tpu.memory_space<vmem>>, vector<32x8xf32>
    %c0_1 = arith.constant 0 : index
    %c0_2 = arith.constant 0 : index
    %1 = vector.load %arg1[%c0_1, %c0_2] : memref<8x16xf32, #tpu.memory_space<vmem>>, vector<8x16xf32>
    %cst = arith.constant dense<0.000000e+00> : vector<32x16xf32>
    %2 = tpu.matmul %0, %1, %cst {dimension_numbers = #tpu.dot_dimension_numbers<[1], [0], [0], [1], [0, 0, 1, 1], [], []>} : vector<32x8xf32>, vector<8x16xf32>, vector<32x16xf32> -> vector<32x16xf32>
    %c0_3 = arith.constant 0 : index
    %c0_4 = arith.constant 0 : index
    %3 = vector.load %arg2[%c0_3, %c0_4] : memref<1x16xf32, #tpu.memory_space<vmem>>, vector<1x16xf32>
    %4 = vector.broadcast %3 : vector<1x16xf32> to vector<32x16xf32>
    %5 = arith.addf %2, %4 : vector<32x16xf32>
    %cst_5 = arith.constant 0.000000e+00 : f32
    %6 = vector.broadcast %cst_5 : f32 to vector<32x16xf32>
    %7 = arith.maximumf %5, %6 : vector<32x16xf32>
    %c0_6 = arith.constant 0 : index
    %c0_7 = arith.constant 0 : index
    %8 = vector.load %arg3[%c0_6, %c0_7] : memref<16x8xf32, #tpu.memory_space<vmem>>, vector<16x8xf32>
    %cst_8 = arith.constant dense<0.000000e+00> : vector<32x8xf32>
    %9 = tpu.matmul %7, %8, %cst_8 {dimension_numbers = #tpu.dot_dimension_numbers<[1], [0], [0], [1], [0, 0, 1, 1], [], []>} : vector<32x16xf32>, vector<16x8xf32>, vector<32x8xf32> -> vector<32x8xf32>
    %c0_9 = arith.constant 0 : index
    %c0_10 = arith.constant 0 : index
    %10 = vector.load %arg4[%c0_9, %c0_10] : memref<1x8xf32, #tpu.memory_space<vmem>>, vector<1x8xf32>
    %11 = vector.broadcast %10 : vector<1x8xf32> to vector<32x8xf32>
    %12 = arith.addf %9, %11 : vector<32x8xf32>
    %cst_11 = arith.constant 0.000000e+00 : f32
    %13 = vector.broadcast %cst_11 : f32 to vector<32x8xf32>
    %14 = arith.maximumf %12, %13 : vector<32x8xf32>
    %cst_12 = arith.constant 0.000000e+00 : f32
    %15 = vector.broadcast %cst_12 : f32 to vector<4x8xf32>
    %16 = tpu.concatenate %15, %14, %15 in 0 : vector<4x8xf32>, vector<32x8xf32>, vector<4x8xf32> -> vector<40x8xf32>
    %17 = vector.extract_strided_slice %16 {offsets = [0, 0], sizes = [32, 8], strides = [1, 1]} : vector<40x8xf32> to vector<32x8xf32>
    %18 = vector.extract_strided_slice %16 {offsets = [2, 0], sizes = [32, 8], strides = [1, 1]} : vector<40x8xf32> to vector<32x8xf32>
    %19 = vector.extract_strided_slice %16 {offsets = [4, 0], sizes = [32, 8], strides = [1, 1]} : vector<40x8xf32> to vector<32x8xf32>
    %20 = vector.extract_strided_slice %16 {offsets = [6, 0], sizes = [32, 8], strides = [1, 1]} : vector<40x8xf32> to vector<32x8xf32>
    %21 = vector.extract_strided_slice %16 {offsets = [8, 0], sizes = [32, 8], strides = [1, 1]} : vector<40x8xf32> to vector<32x8xf32>
    %22 = tpu.concatenate %17, %18, %19, %20, %21 in 1 : vector<32x8xf32>, vector<32x8xf32>, vector<32x8xf32>, vector<32x8xf32>, vector<32x8xf32> -> vector<32x40xf32>
    %c0_13 = arith.constant 0 : index
    %c0_14 = arith.constant 0 : index
    %23 = vector.load %arg5[%c0_13, %c0_14] : memref<40x32xf32, #tpu.memory_space<vmem>>, vector<40x32xf32>
    %cst_15 = arith.constant dense<0.000000e+00> : vector<32x32xf32>
    %24 = tpu.matmul %22, %23, %cst_15 {dimension_numbers = #tpu.dot_dimension_numbers<[1], [0], [0], [1], [0, 0, 1, 1], [], []>} : vector<32x40xf32>, vector<40x32xf32>, vector<32x32xf32> -> vector<32x32xf32>
    %c0_16 = arith.constant 0 : index
    %c0_17 = arith.constant 0 : index
    %25 = vector.load %arg6[%c0_16, %c0_17] : memref<1x32xf32, #tpu.memory_space<vmem>>, vector<1x32xf32>
    %26 = vector.broadcast %25 : vector<1x32xf32> to vector<32x32xf32>
    %27 = arith.addf %24, %26 : vector<32x32xf32>
    %cst_18 = arith.constant 0.000000e+00 : f32
    %28 = vector.broadcast %cst_18 : f32 to vector<32x32xf32>
    %29 = arith.maximumf %27, %28 : vector<32x32xf32>
    %c0_19 = arith.constant 0 : index
    %c0_20 = arith.constant 0 : index
    %30 = vector.load %arg7[%c0_19, %c0_20] : memref<1x32xf32, #tpu.memory_space<vmem>>, vector<1x32xf32>
    %31 = vector.broadcast %30 : vector<1x32xf32> to vector<32x32xf32>
    %32 = arith.mulf %29, %31 : vector<32x32xf32>
    %c0_21 = arith.constant 0 : index
    %c0_22 = arith.constant 0 : index
    %33 = vector.load %arg8[%c0_21, %c0_22] : memref<1x32xf32, #tpu.memory_space<vmem>>, vector<1x32xf32>
    %34 = vector.broadcast %33 : vector<1x32xf32> to vector<32x32xf32>
    %35 = arith.addf %32, %34 : vector<32x32xf32>
    %cst_23 = arith.constant 0.000000e+00 : f32
    %36 = vector.broadcast %cst_23 : f32 to vector<4x32xf32>
    %37 = tpu.concatenate %36, %35, %36 in 0 : vector<4x32xf32>, vector<32x32xf32>, vector<4x32xf32> -> vector<40x32xf32>
    %38 = vector.extract_strided_slice %37 {offsets = [0, 0], sizes = [32, 32], strides = [1, 1]} : vector<40x32xf32> to vector<32x32xf32>
    %39 = vector.extract_strided_slice %37 {offsets = [2, 0], sizes = [32, 32], strides = [1, 1]} : vector<40x32xf32> to vector<32x32xf32>
    %40 = vector.extract_strided_slice %37 {offsets = [4, 0], sizes = [32, 32], strides = [1, 1]} : vector<40x32xf32> to vector<32x32xf32>
    %41 = vector.extract_strided_slice %37 {offsets = [6, 0], sizes = [32, 32], strides = [1, 1]} : vector<40x32xf32> to vector<32x32xf32>
    %42 = vector.extract_strided_slice %37 {offsets = [8, 0], sizes = [32, 32], strides = [1, 1]} : vector<40x32xf32> to vector<32x32xf32>
    %43 = tpu.concatenate %38, %39, %40, %41, %42 in 1 : vector<32x32xf32>, vector<32x32xf32>, vector<32x32xf32>, vector<32x32xf32>, vector<32x32xf32> -> vector<32x160xf32>
    %c0_24 = arith.constant 0 : index
    %c0_25 = arith.constant 0 : index
    %44 = vector.load %arg9[%c0_24, %c0_25] : memref<160x32xf32, #tpu.memory_space<vmem>>, vector<160x32xf32>
    %cst_26 = arith.constant dense<0.000000e+00> : vector<32x32xf32>
    %45 = tpu.matmul %43, %44, %cst_26 {dimension_numbers = #tpu.dot_dimension_numbers<[1], [0], [0], [1], [0, 0, 1, 1], [], []>} : vector<32x160xf32>, vector<160x32xf32>, vector<32x32xf32> -> vector<32x32xf32>
    %c0_27 = arith.constant 0 : index
    %c0_28 = arith.constant 0 : index
    %46 = vector.load %arg10[%c0_27, %c0_28] : memref<1x32xf32, #tpu.memory_space<vmem>>, vector<1x32xf32>
    %47 = vector.broadcast %46 : vector<1x32xf32> to vector<32x32xf32>
    %48 = arith.addf %45, %47 : vector<32x32xf32>
    %cst_29 = arith.constant 0.000000e+00 : f32
    %49 = vector.broadcast %cst_29 : f32 to vector<32x32xf32>
    %50 = arith.maximumf %48, %49 : vector<32x32xf32>
    %c0_30 = arith.constant 0 : index
    %c0_31 = arith.constant 0 : index
    %51 = vector.load %arg11[%c0_30, %c0_31] : memref<1x32xf32, #tpu.memory_space<vmem>>, vector<1x32xf32>
    %52 = vector.broadcast %51 : vector<1x32xf32> to vector<32x32xf32>
    %53 = arith.mulf %50, %52 : vector<32x32xf32>
    %c0_32 = arith.constant 0 : index
    %c0_33 = arith.constant 0 : index
    %54 = vector.load %arg12[%c0_32, %c0_33] : memref<1x32xf32, #tpu.memory_space<vmem>>, vector<1x32xf32>
    %55 = vector.broadcast %54 : vector<1x32xf32> to vector<32x32xf32>
    %56 = arith.addf %53, %55 : vector<32x32xf32>
    %cst_34 = arith.constant 0.000000e+00 : f32
    %57 = vector.broadcast %cst_34 : f32 to vector<4x32xf32>
    %58 = tpu.concatenate %57, %56, %57 in 0 : vector<4x32xf32>, vector<32x32xf32>, vector<4x32xf32> -> vector<40x32xf32>
    %59 = vector.extract_strided_slice %58 {offsets = [0, 0], sizes = [32, 32], strides = [1, 1]} : vector<40x32xf32> to vector<32x32xf32>
    %60 = vector.extract_strided_slice %58 {offsets = [2, 0], sizes = [32, 32], strides = [1, 1]} : vector<40x32xf32> to vector<32x32xf32>
    %61 = vector.extract_strided_slice %58 {offsets = [4, 0], sizes = [32, 32], strides = [1, 1]} : vector<40x32xf32> to vector<32x32xf32>
    %62 = vector.extract_strided_slice %58 {offsets = [6, 0], sizes = [32, 32], strides = [1, 1]} : vector<40x32xf32> to vector<32x32xf32>
    %63 = vector.extract_strided_slice %58 {offsets = [8, 0], sizes = [32, 32], strides = [1, 1]} : vector<40x32xf32> to vector<32x32xf32>
    %64 = tpu.concatenate %59, %60, %61, %62, %63 in 1 : vector<32x32xf32>, vector<32x32xf32>, vector<32x32xf32>, vector<32x32xf32>, vector<32x32xf32> -> vector<32x160xf32>
    %c0_35 = arith.constant 0 : index
    %c0_36 = arith.constant 0 : index
    %65 = vector.load %arg13[%c0_35, %c0_36] : memref<160x32xf32, #tpu.memory_space<vmem>>, vector<160x32xf32>
    %cst_37 = arith.constant dense<0.000000e+00> : vector<32x32xf32>
    %66 = tpu.matmul %64, %65, %cst_37 {dimension_numbers = #tpu.dot_dimension_numbers<[1], [0], [0], [1], [0, 0, 1, 1], [], []>} : vector<32x160xf32>, vector<160x32xf32>, vector<32x32xf32> -> vector<32x32xf32>
    %c0_38 = arith.constant 0 : index
    %c0_39 = arith.constant 0 : index
    %67 = vector.load %arg14[%c0_38, %c0_39] : memref<1x32xf32, #tpu.memory_space<vmem>>, vector<1x32xf32>
    %68 = vector.broadcast %67 : vector<1x32xf32> to vector<32x32xf32>
    %69 = arith.addf %66, %68 : vector<32x32xf32>
    %cst_40 = arith.constant 0.000000e+00 : f32
    %70 = vector.broadcast %cst_40 : f32 to vector<32x32xf32>
    %71 = arith.maximumf %69, %70 : vector<32x32xf32>
    %c0_41 = arith.constant 0 : index
    %c0_42 = arith.constant 0 : index
    %72 = vector.load %arg15[%c0_41, %c0_42] : memref<1x32xf32, #tpu.memory_space<vmem>>, vector<1x32xf32>
    %73 = vector.broadcast %72 : vector<1x32xf32> to vector<32x32xf32>
    %74 = arith.mulf %71, %73 : vector<32x32xf32>
    %c0_43 = arith.constant 0 : index
    %c0_44 = arith.constant 0 : index
    %75 = vector.load %arg16[%c0_43, %c0_44] : memref<1x32xf32, #tpu.memory_space<vmem>>, vector<1x32xf32>
    %76 = vector.broadcast %75 : vector<1x32xf32> to vector<32x32xf32>
    %77 = arith.addf %74, %76 : vector<32x32xf32>
    %c0_45 = arith.constant 0 : index
    %c0_46 = arith.constant 0 : index
    %78 = vector.load %arg17[%c0_45, %c0_46] : memref<32x32xf32, #tpu.memory_space<vmem>>, vector<32x32xf32>
    %cst_47 = arith.constant dense<0.000000e+00> : vector<32x32xf32>
    %79 = tpu.matmul %77, %78, %cst_47 {dimension_numbers = #tpu.dot_dimension_numbers<[1], [0], [0], [1], [0, 0, 1, 1], [], []>} : vector<32x32xf32>, vector<32x32xf32>, vector<32x32xf32> -> vector<32x32xf32>
    %c0_48 = arith.constant 0 : index
    %c0_49 = arith.constant 0 : index
    %80 = vector.load %arg18[%c0_48, %c0_49] : memref<1x32xf32, #tpu.memory_space<vmem>>, vector<1x32xf32>
    %81 = vector.broadcast %80 : vector<1x32xf32> to vector<32x32xf32>
    %82 = arith.addf %79, %81 : vector<32x32xf32>
    %c0_50 = arith.constant 0 : index
    %c0_51 = arith.constant 0 : index
    %83 = vector.load %arg19[%c0_50, %c0_51] : memref<32x32xf32, #tpu.memory_space<vmem>>, vector<32x32xf32>
    tpu.vector_store %arg19[%c0_50, %c0_51], %82 {strides = array<i32>} : memref<32x32xf32, #tpu.memory_space<vmem>>, vector<32x32xf32>,
    return
  }
}

</mosaic_0001>

<bundles_post_ra>
// kernel: tpu_custom_call.1
= control target key start
LH: loop header
LB: loop body
LE: loop exit
PB: predicated region body
PF: predicated region fallthrough
CT: control target
= control target key end

     0   :  { %s1964_s0 = inlined_call_operand.vmem [shape: f32[32,8], index: 0, kind: input, shape index: {}]   ;;  %s1965_s1 = inlined_call_operand.vmem [shape: f32[8,16], index: 1, kind: input, shape index: {}]   ;;  %s1966_s2 = inlined_call_operand.vmem [shape: f32[1,16], index: 2, kind: input, shape index: {}]   ;;  %s1967_s3 = inlined_call_operand.vmem [shape: f32[16,8], index: 3, kind: input, shape index: {}]   ;;  %s1968_s4 = inlined_call_operand.vmem [shape: f32[1,8], index: 4, kind: input, shape index: {}]   ;;  %s1969_s5 = inlined_call_operand.vmem [shape: f32[40,32], index: 5, kind: input, shape index: {}]   ;;  %s1970_s6 = inlined_call_operand.vmem [shape: f32[1,32], index: 6, kind: input, shape index: {}]   ;;  %s1971_s7 = inlined_call_operand.vmem [shape: f32[1,32], index: 7, kind: input, shape index: {}]   ;;  %s1972_s8 = inlined_call_operand.vmem [shape: f32[1,32], index: 8, kind: input, shape index: {}]   ;;  %s1973_s9 = inlined_call_operand.vmem [shape: f32[160,32], index: 9, kind: input, shape index: {}]   ;;  %s1974_s10 = inlined_call_operand.vmem [shape: f32[1,32], index: 10, kind: input, shape index: {}]   ;;  %s1975_s11 = inlined_call_operand.vmem [shape: f32[1,32], index: 11, kind: input, shape index: {}]   ;;  %s1976_s12 = inlined_call_operand.vmem [shape: f32[1,32], index: 12, kind: input, shape index: {}]   ;;  %s1977_s13 = inlined_call_operand.vmem [shape: f32[160,32], index: 13, kind: input, shape index: {}]   ;;  %s1978_s14 = inlined_call_operand.vmem [shape: f32[1,32], index: 14, kind: input, shape index: {}]   ;;  %s1979_s15 = inlined_call_operand.vmem [shape: f32[1,32], index: 15, kind: input, shape index: {}]   ;;  %s1980_s16 = inlined_call_operand.vmem [shape: f32[1,32], index: 16, kind: input, shape index: {}]   ;;  %s1981_s17 = inlined_call_operand.vmem [shape: f32[32,32], index: 17, kind: input, shape index: {}]   ;;  %s1982_s18 = inlined_call_operand.vmem [shape: f32[1,32], index: 18, kind: input, shape index: {}]   ;;  %s1983_s19 = inlined_call_operand.hbm [shape: f32[32,32], index: 19, kind: output, shape index: {}]  }
   0x1   :  { %1986 = sst [smem:[#allocation5_spill]] %s1964_s0 }
   0x2   :  { %1987 = sst [smem:[#allocation6_spill]] %s1965_s1 }
   0x3   :  { %1988 = sst [smem:[#allocation7_spill]] %s1966_s2 }
   0x4   :  { %1989 = sst [smem:[#allocation8_spill]] %s1967_s3 }
   0x5   :  { %1990 = sst [smem:[#allocation9_spill]] %s1978_s14 }
   0x6   :  { %s1991_s20 = sld [smem:[#allocation6_spill]]  ;;  %s1992_s14 = sld [smem:[#allocation5_spill]]  ;;  %vm75_vm0 = vcmask 64512  }
   0xc   :  { %v67_v0 = vld [vmem:[%s1991_s20] sm:$0xff]  ;;  %v64_v2 = vld [vmem:[%s1992_s14 + $0x8] sm:$0xff]  ;;  %v65_v3 = vld [vmem:[%s1992_s14 + $0x10] sm:$0xff] }
   0xd   :  { %v63_v1 = vld [vmem:[%s1992_s14] sm:$0xff]  ;;  %1216 = vmatprep.subr.mxu0 %v67_v0 }
   0xe   :  { %1218 = vmatprep.mubr.msk.f32.mxu0 %vm75_vm0, %v63_v1 }
   0xf   :  { %24 = vsyncpa [#allocation3], 0  ;;  %1217 = vmatpush3.msra.mxu0 %v67_v0  ;;  %v66_v4 = vld [vmem:[%s1992_s14 + $0x18] sm:$0xff]  ;;  %s1993_s28 = sld [smem:[#allocation8_spill]]  ;;  %s1994_s21 = sld [smem:[#allocation7_spill]]  ;;  %vm186_vm1 = vcmask 130048  }
  0x10   :  { %1219 = vmatmul.mubr.msk.f32.vlgmr.msra.gmra.mrb[0].mxu0 %vm75_vm0, %v64_v2  ;;  %v1157_v21 = vld [vmem:[%s1968_s4] ss:$0 sm:$0xff]  ;;  %v405_v30 = vld [vmem:[%s1969_s5 + $0x8] sm:$0xff]  ;;  %vm292_vm2 = vcmask 1043456   ;;  %vm309_vm3 = vcmask 1045504   ;;  %v406_v38 = vld [vmem:[%s1969_s5 + $0x10] sm:$0xff] }
  0x11   :  { %1221 = vmatprep.mubr.msk.f32.mxu0 %vm75_vm0, %v65_v3  ;;  %v404_v29 = vld [vmem:[%s1969_s5] sm:$0xff]  ;;  %v407_v39 = vld [vmem:[%s1969_s5 + $0x18] sm:$0xff]  ;;  %s1407_s27 = smov 32   ;;  %s1409_s29 = smov 8   ;;  %vm352_vm4 = vcmask 1041408   ;;  %vm394_vm5 = vcmask 195584  }
  0x12   :  { %v1268_v34 = vpack.c.bf16 %v405_v30, %v404_v29  ;;  %v1272_v43 = vpack.c.bf16 %v407_v39, %v406_v38  ;;  %v408_v57 = vld [vmem:[%s1969_s5 + $0x20] sm:$0xff]  ;;  %s1410_s20 = smov 24   ;;  %vm399_vm6 = vcmask 261120   ;;  %vm416_vm7 = vcmask 326656   ;;  %s1413_s26 = smov 96  }
  0x13   :  { %vm627_vm8 = vcmask 523264   ;;  %vm632_vm9 = vcmask 785408   ;;  %s1995_s23 = sld [smem:[#allocation9_spill]] }
  0x14   :  { %1222 = vmatmul.mubr.msk.f32.gmra.mrb[2].mxu0 %vm75_vm0, %v66_v4  ;;  %1269 = vmatprep.subr.bf16.mxu0 %v1268_v34 }
  0x15   :  { %v177_v5 = vld [vmem:[%s1993_s28] sm:$0xff]  ;;  %v178_v6 = vld [vmem:[%s1993_s28 + $0x8] sm:$0xff]  ;;  %1271 = vmatpush3.bf16.msra.mxu0 %v1268_v34  ;;  %s1408_s28 = smov 16  }
  0x16   :  { %v1264_v7 = vpack.c.bf16 %v178_v6, %v177_v5  ;;  %v1152_v8 = vld [vmem:[%s1994_s21] ss:$0 sm:$0xff]  ;;  %1273 = vmatprep.subr.bf16.mxu0 %v1272_v43 }
  0x18   :  { %1265 = vmatprep.subr.bf16.mxu1 %v1264_v7 }
  0x19   :  { %1267 = vmatpush3.bf16.msra.mxu1 %v1264_v7  ;;  %1275 = vmatpush3.bf16.msra.mxu0 %v1272_v43 }
  0x1a   :  { %1242 = vmatprep.subr.mxu0 %v408_v57 }
  0x1d   :  { %1243 = vmatpush3.msra.mxu0 %v408_v57 }
  0xe3   :  { %v1220_v9 = vpop.f32.mrb[0].mxu0 }
  0xe4   :  { %v160_v10 = vadd.f32 %v1220_v9, %v1152_v8  ;;  %v154_v11 = vpop.f32.mrb[1].mxu0 }
  0xe5   :  { %v155_v12 = vadd.f32 %v1152_v8, %v154_v11 }
  0xe6   :  { %v174_v15 = vmax.f32 %v160_v10, 0.0 }
  0xe7   :  { %v173_v13 = vmax.f32 %v155_v12, 0.0  ;;  %v1223_v14 = vpop.f32.mrb[2].mxu0 }
  0xe8   :  { %v170_v16 = vadd.f32 %v1223_v14, %v1152_v8  ;;  %v164_v17 = vpop.f32.mrb[3].mxu0 }
  0xe9   :  { %v165_v18 = vadd.f32 %v1152_v8, %v164_v17  ;;  %1228 = vmatprep.mubr.msk.f32.mxu1 %vm186_vm1, %v173_v13 }
  0xea   :  { %1229 = vmatmul.mubr.msk.f32.vlgmr.msra.gmra.mrb[0].mxu1 %vm186_vm1, %v174_v15  ;;  %v176_v20 = vmax.f32 %v170_v16, 0.0 }
  0xeb   :  { %v175_v19 = vmax.f32 %v165_v18, 0.0 }
  0xed   :  { %1231 = vmatprep.mubr.msk.f32.mxu1 %vm186_vm1, %v175_v19 }
  0xee   :  { %1232 = vmatmul.mubr.msk.f32.gmra.mrb[2].mxu1 %vm186_vm1, %v176_v20 }
 0x1bd   :  { %v1230_v22 = vpop.f32.mrb[0].mxu1 }
 0x1be   :  { %v271_v23 = vadd.f32 %v1230_v22, %v1157_v21  ;;  %v265_v24 = vpop.f32.mrb[1].mxu1 }
 0x1bf   :  { %v266_v25 = vadd.f32 %v1157_v21, %v265_v24 }
 0x1c0   :  { %v285_v26 = vmax.f32 %v271_v23, 0.0 }
 0x1c1   :  { %v284_v27 = vmax.f32 %v266_v25, 0.0  ;;  %v1233_v28 = vpop.f32.mrb[2].mxu1 }
 0x1c2   :  { %v294_v31 = vrot.slane %v285_v26, 4  ;;  %v281_v32 = vadd.f32 %v1233_v28, %v1157_v21  ;;  %v275_v33 = vpop.f32.mrb[3].mxu1 }
 0x1c3   :  { %v293_v35 = vrot.slane %v284_v27, 4  ;;  %v276_v36 = vadd.f32 %v1157_v21, %v275_v33 }
 0x1c4   :  { %v287_v37 = vmax.f32 %v281_v32, 0.0 }
 0x1c5   :  { %v1564_v40 = vsel %vm292_vm2, 0.0, %v293_v35  ;;  %v286_v41 = vmax.f32 %v276_v36, 0.0  ;;  %v1567_v42 = vsel %vm292_vm2, %v293_v35, %v294_v31 }
 0x1c6   :  { %v298_v44 = vrot.slane %v287_v37, 4  ;;  %374 = vrot.lane.b32.xlu0 %v1567_v42, %s1407_s27  ;;  %v331_v45 = vrot.slane %v1564_v40, 4  ;;  %v332_v46 = vrot.slane %v1567_v42, 4  ;;  %v310_v47 = vrot.slane %v1564_v40, 2 }
 0x1c7   :  { %v296_v48 = vrot.slane %v286_v41, 4  ;;  %v311_v49 = vrot.slane %v1567_v42, 2  ;;  %v353_v51 = vrot.slane %v1564_v40, 6  ;;  %v354_v55 = vrot.slane %v1567_v42, 6 }
 0x1c8   :  { %v333_v50 = vsel %vm292_vm2, %v331_v45, %v332_v46  ;;  %v306_v0 = vsel %vm292_vm2, %v298_v44, 0.0  ;;  %v637_v45 = vld [vmem:[%s1973_s9] sm:$0xff] }
 0x1c9   :  { %v1578_v52 = vsel %vm292_vm2, %v294_v31, %v296_v48  ;;  %v1581_v53 = vsel %vm292_vm2, %v296_v48, %v298_v44  ;;  %340 = vrot.lane.b32.xlu1 %v333_v50, %s1408_s28  ;;  %v312_v54 = vsel %vm309_vm3, %v310_v47, %v311_v49  ;;  %v355_v60 = vsel %vm352_vm4, %v353_v51, %v354_v55  ;;  %v639_v47 = vld [vmem:[%s1973_s9 + $0x10] sm:$0xff]  ;;  %v640_v50 = vld [vmem:[%s1973_s9 + $0x18] sm:$0xff] }
 0x1ca   :  { %319 = vrot.lane.b32.xlu0 %v312_v54, %s1409_s29  ;;  %v334_v56 = vrot.slane %v1578_v52, 4  ;;  %v356_v59 = vrot.slane %v1578_v52, 6  ;;  %v313_v62 = vrot.slane %v1578_v52, 2  ;;  %v315_v63 = vrot.slane %v1581_v53, 2 }
 0x1cb   :  { %v317_v2 = vrot.slane %v306_v0, 2  ;;  %v336_v4 = vrot.slane %v1581_v53, 4  ;;  %v338_v6 = vrot.slane %v306_v0, 4  ;;  %v358_v8 = vrot.slane %v1581_v53, 6 }
 0x1cc   :  { %v335_v58 = vsel %vm292_vm2, %v332_v46, %v334_v56  ;;  %v357_v61 = vsel %vm352_vm4, %v354_v55, %v356_v59  ;;  %v316_v1 = vsel %vm309_vm3, %v313_v62, %v315_v63  ;;  %v314_v3 = vsel %vm309_vm3, %v311_v49, %v313_v62  ;;  %v638_v46 = vld [vmem:[%s1973_s9 + $0x8] sm:$0xff]  ;;  %v643_v55 = vld [vmem:[%s1973_s9 + $0x30] sm:$0xff]  ;;  %v648_v62 = vld [vmem:[%s1973_s9 + $0x58] sm:$0xff] }
 0x1cd   :  { %342 = vrot.lane.b32.xlu1 %v335_v58, %s1408_s28  ;;  %v318_v5 = vsel %vm309_vm3, %v315_v63, %v317_v2  ;;  %v337_v7 = vsel %vm292_vm2, %v334_v56, %v336_v4  ;;  %v339_v9 = vsel %vm292_vm2, %v336_v4, %v338_v6  ;;  %v360_v10 = vrot.slane %v306_v0, 6  ;;  %v644_v56 = vld [vmem:[%s1973_s9 + $0x38] sm:$0xff]  ;;  %v645_v58 = vld [vmem:[%s1973_s9 + $0x40] sm:$0xff] }
 0x1ce   :  { %362 = vrot.lane.b32.xlu0 %v355_v60, %s1410_s20  ;;  %v359_v11 = vsel %vm352_vm4, %v356_v59, %v358_v8  ;;  %v1411_v48 = vmov 0.0|0.0   ;;  %v1277_v49 = vpack.c.bf16 %v638_v46, %v637_v45  ;;  %v1280_v51 = vpack.c.bf16 %v640_v50, %v639_v47  ;;  %v646_v59 = vld [vmem:[%s1973_s9 + $0x48] sm:$0xff]  ;;  %v652_v4 = vld [vmem:[%s1973_s9 + $0x78] sm:$0xff]  ;;  %v1162_v6 = vld [vmem:[%s1970_s6] ss:$0 sm:$0xff] }
 0x1cf   :  { %v361_v12 = vsel %vm352_vm4, %v358_v8, %v360_v10  ;;  %1276 = vmatprep.subr.bf16.mxu1 %v1411_v48  ;;  %1306 = vmatprep.subr.bf16.mxu0 %v1411_v48  ;;  %v1286_v57 = vpack.c.bf16 %v644_v56, %v643_v55  ;;  %v1289_v60 = vpack.c.bf16 %v646_v59, %v645_v58  ;;  %v1167_v10 = vld [vmem:[%s1971_s7] ss:$0 sm:$0xff] }
 0x1d0   :  { %1278 = vmatpush1.bf16.msra.mxu1 %v1277_v49 }
 0x1d1   :  { %364 = vrot.lane.b32.xlu1 %v357_v61, %s1410_s20  ;;  %1279 = vmatprep.subr.bf16.mxu1 %v1411_v48  ;;  %v647_v61 = vld [vmem:[%s1973_s9 + $0x50] sm:$0xff] }
 0x1d2   :  { %376 = vrot.lane.b32.xlu0 %v1578_v52, %s1407_s27  ;;  %v1292_v63 = vpack.c.bf16 %v648_v62, %v647_v61 }
 0x1d4   :  { %1281 = vmatpush1.bf16.msra.mxu1 %v1280_v51 }
 0x1d5   :  { %323 = vrot.lane.b32.xlu1 %v316_v1, %s1409_s29  ;;  %1282 = vmatprep.subr.bf16.mxu1 %v1411_v48  ;;  %v650_v1 = vld [vmem:[%s1973_s9 + $0x68] sm:$0xff] }
 0x1d6   :  { %321 = vrot.lane.b32.xlu0 %v314_v3, %s1409_s29  ;;  %v651_v3 = vld [vmem:[%s1973_s9 + $0x70] sm:$0xff] }
 0x1d9   :  { %325 = vrot.lane.b32.xlu1 %v318_v5, %s1409_s29  ;;  %v1298_v5 = vpack.c.bf16 %v652_v4, %v651_v3 }
 0x1da   :  { %344 = vrot.lane.b32.xlu0 %v337_v7, %s1408_s28 }
 0x1dd   :  { %346 = vrot.lane.b32.xlu1 %v339_v9, %s1408_s28 }
 0x1de   :  { %366 = vrot.lane.b32.xlu0 %v359_v11, %s1410_s20 }
 0x1e1   :  { %368 = vrot.lane.b32.xlu1 %v361_v12, %s1410_s20 }
 0x1e2   :  { %378 = vrot.lane.b32.xlu0 %v1581_v53, %s1407_s27 }
 0x1e5   :  { %380 = vrot.lane.b32.xlu1 %v306_v0, %s1407_s27  ;;  %v649_v0 = vld [vmem:[%s1973_s9 + $0x60] sm:$0xff] }
 0x1e6   :  { %v1295_v2 = vpack.c.bf16 %v650_v1, %v649_v0 }
 0x238   :  { %v375_v13 = vpop.permute.xlu0 %374 }
 0x23b   :  { %v341_v14 = vpop.permute.xlu1 %340 }
 0x23c   :  { %v320_v15 = vpop.permute.xlu0 %319 }
 0x23d   :  { %v386_v16 = vsel %vm75_vm0, %v1564_v40, %v320_v15 }
 0x23e   :  { %v390_v18 = vsel %vm186_vm1, %v386_v16, %v341_v14 }
 0x23f   :  { %v343_v17 = vpop.permute.xlu1 %342 }
 0x240   :  { %v363_v19 = vpop.permute.xlu0 %362 }
 0x241   :  { %v395_v20 = vsel %vm394_vm5, %v390_v18, %v363_v19 }
 0x242   :  { %v400_v21 = vsel %vm399_vm6, %v395_v20, %v375_v13  ;;  %v1168_v13 = vld [vmem:[%s1972_s8] ss:$0 sm:$0xff] }
 0x243   :  { %v365_v22 = vpop.permute.xlu1 %364  ;;  %1244 = vmatprep.mubr.msk.f32.mxu0 %vm416_vm7, %v400_v21 }
 0x244   :  { %v377_v23 = vpop.permute.xlu0 %376 }
 0x247   :  { %v324_v24 = vpop.permute.xlu1 %323 }
 0x248   :  { %v322_v25 = vpop.permute.xlu0 %321  ;;  %v388_v34 = vsel %vm75_vm0, %v1578_v52, %v324_v24  ;;  %v641_v52 = vld [vmem:[%s1973_s9 + $0x20] sm:$0xff] }
 0x249   :  { %v387_v26 = vsel %vm75_vm0, %v1567_v42, %v322_v25 }
 0x24a   :  { %v391_v27 = vsel %vm186_vm1, %v387_v26, %v343_v17 }
 0x24b   :  { %v396_v28 = vsel %vm394_vm5, %v391_v27, %v365_v22  ;;  %v326_v29 = vpop.permute.xlu1 %325 }
 0x24c   :  { %v345_v30 = vpop.permute.xlu0 %344  ;;  %v401_v31 = vsel %vm399_vm6, %v396_v28, %v377_v23  ;;  %v389_v39 = vsel %vm75_vm0, %v1581_v53, %v326_v29  ;;  %v642_v53 = vld [vmem:[%s1973_s9 + $0x28] sm:$0xff] }
 0x24d   :  { %1245 = vmatmul.mubr.msk.f32.vlgmr.msra.gmra.mrb[4].mxu0 %vm416_vm7, %v401_v31  ;;  %v392_v35 = vsel %vm186_vm1, %v388_v34, %v345_v30  ;;  %v1283_v54 = vpack.c.bf16 %v642_v53, %v641_v52  ;;  %v653_v31 = vld [vmem:[%s1973_s9 + $0x80] sm:$0xff] }
 0x24f   :  { %v347_v32 = vpop.permute.xlu1 %346  ;;  %1284 = vmatpush1.bf16.msra.mxu1 %v1283_v54 }
 0x250   :  { %v367_v33 = vpop.permute.xlu0 %366  ;;  %v393_v41 = vsel %vm186_vm1, %v389_v39, %v347_v32  ;;  %1285 = vmatprep.subr.bf16.mxu1 %v1411_v48  ;;  %v654_v32 = vld [vmem:[%s1973_s9 + $0x88] sm:$0xff] }
 0x251   :  { %v397_v37 = vsel %vm394_vm5, %v392_v35, %v367_v33  ;;  %v1301_v35 = vpack.c.bf16 %v654_v32, %v653_v31 }
 0x253   :  { %v369_v36 = vpop.permute.xlu1 %368  ;;  %1287 = vmatpush1.bf16.msra.mxu1 %v1286_v57 }
 0x254   :  { %v379_v38 = vpop.permute.xlu0 %378  ;;  %v398_v42 = vsel %vm394_vm5, %v393_v41, %v369_v36  ;;  %1288 = vmatprep.subr.bf16.mxu1 %v1411_v48 }
 0x255   :  { %v402_v40 = vsel %vm399_vm6, %v397_v37, %v379_v38  ;;  %v655_v37 = vld [vmem:[%s1973_s9 + $0x90] sm:$0xff]  ;;  %v656_v38 = vld [vmem:[%s1973_s9 + $0x98] sm:$0xff]  ;;  %s1412_s9 = smov 64  }
 0x256   :  { %1247 = vmatprep.mubr.msk.f32.mxu0 %vm416_vm7, %v402_v40  ;;  %v1304_v40 = vpack.c.bf16 %v656_v38, %v655_v37  ;;  %v878_v38 = vld [vmem:[%s1977_s13] sm:$0xff] }
 0x257   :  { %v381_v43 = vpop.permute.xlu1 %380  ;;  %1290 = vmatpush1.bf16.msra.mxu1 %v1289_v60 }
 0x258   :  { %v403_v44 = vsel %vm399_vm6, %v398_v42, %v381_v43  ;;  %1291 = vmatprep.subr.bf16.mxu1 %v1411_v48 }
 0x259   :  { %1248 = vmatmul.mubr.msk.f32.gmra.mrb[6].mxu0 %vm416_vm7, %v403_v44 }
 0x25b   :  { %1293 = vmatpush1.bf16.msra.mxu1 %v1292_v63 }
 0x25c   :  { %1294 = vmatprep.subr.bf16.mxu1 %v1411_v48 }
 0x25f   :  { %1296 = vmatpush1.bf16.msra.mxu1 %v1295_v2 }
 0x260   :  { %1297 = vmatprep.subr.bf16.mxu1 %v1411_v48 }
 0x263   :  { %1299 = vmatpush1.bf16.msra.mxu1 %v1298_v5 }
 0x264   :  { %1300 = vmatprep.subr.bf16.mxu1 %v1411_v48 }
 0x267   :  { %1302 = vmatpush1.bf16.msra.mxu1 %v1301_v35 }
 0x268   :  { %1303 = vmatprep.subr.bf16.mxu1 %v1411_v48 }
 0x26b   :  { %1305 = vmatpush1.bf16.msra.mxu1 %v1304_v40  ;;  %v880_v40 = vld [vmem:[%s1977_s13 + $0x10] sm:$0xff] }
 0x320   :  { %v1246_v7 = vpop.f32.mrb[4].mxu0 }
 0x321   :  { %v501_v8 = vadd.f32 %v1246_v7, %v1162_v6  ;;  %v495_v9 = vpop.f32.mrb[5].mxu0 }
 0x322   :  { %v496_v11 = vadd.f32 %v1162_v6, %v495_v9 }
 0x323   :  { %v515_v12 = vmax.f32 %v501_v8, 0.0 }
 0x324   :  { %v514_v14 = vmax.f32 %v496_v11, 0.0 }
 0x325   :  { %v526_v15 = vmul.f32 %v1167_v10, %v515_v12 }
 0x326   :  { %v525_v16 = vmul.f32 %v1167_v10, %v514_v14 }
 0x327   :  { %v537_v17 = vadd.f32 %v1168_v13, %v526_v15 }
 0x328   :  { %v536_v18 = vadd.f32 %v1168_v13, %v525_v16 }
 0x329   :  { %v545_v19 = vrot.slane %v537_v17, 4 }
 0x32a   :  { %v544_v20 = vrot.slane %v536_v18, 4 }
 0x32c   :  { %v1249_v21 = vpop.f32.mrb[6].mxu0  ;;  %v1710_v22 = vsel %vm292_vm2, %v544_v20, %v545_v19  ;;  %v556_v33 = vsel %vm292_vm2, 0.0, %v544_v20 }
 0x32d   :  { %v511_v23 = vadd.f32 %v1249_v21, %v1162_v6  ;;  %v505_v24 = vpop.f32.mrb[7].mxu0  ;;  %1170 = vmatprep.mubr.msk.f32.mxu1 %vm399_vm6, %v1710_v22  ;;  %v581_v41 = vrot.slane %v556_v33, 4  ;;  %v582_v42 = vrot.slane %v1710_v22, 4  ;;  %v560_v43 = vrot.slane %v556_v33, 2 }
 0x32e   :  { %v506_v25 = vadd.f32 %v1162_v6, %v505_v24  ;;  %v561_v44 = vrot.slane %v1710_v22, 2  ;;  %v602_v51 = vrot.slane %v556_v33, 6  ;;  %v603_v52 = vrot.slane %v1710_v22, 6 }
 0x32f   :  { %v517_v26 = vmax.f32 %v511_v23, 0.0  ;;  %v583_v53 = vsel %vm292_vm2, %v581_v41, %v582_v42 }
 0x330   :  { %v516_v27 = vmax.f32 %v506_v25, 0.0  ;;  %v562_v55 = vsel %vm309_vm3, %v560_v43, %v561_v44  ;;  %v604_v61 = vsel %vm352_vm4, %v602_v51, %v603_v52  ;;  %v886_v51 = vld [vmem:[%s1977_s13 + $0x40] sm:$0xff] }
 0x331   :  { %v528_v28 = vmul.f32 %v1167_v10, %v517_v26 }
 0x332   :  { %v527_v29 = vmul.f32 %v1167_v10, %v516_v27 }
 0x333   :  { %v539_v30 = vadd.f32 %v1168_v13, %v528_v28 }
 0x334   :  { %v538_v34 = vadd.f32 %v1168_v13, %v527_v29 }
 0x335   :  { %v549_v36 = vrot.slane %v539_v30, 4 }
 0x336   :  { %v547_v39 = vrot.slane %v538_v34, 4 }
 0x337   :  { %v557_v2 = vsel %vm292_vm2, %v549_v36, 0.0 }
 0x338   :  { %v1731_v45 = vsel %vm292_vm2, %v545_v19, %v547_v39  ;;  %v1734_v46 = vsel %vm292_vm2, %v547_v39, %v549_v36  ;;  %v588_v5 = vrot.slane %v557_v2, 4  ;;  %v567_v6 = vrot.slane %v557_v2, 2  ;;  %v879_v39 = vld [vmem:[%s1977_s13 + $0x8] sm:$0xff] }
 0x339   :  { %v584_v47 = vrot.slane %v1731_v45, 4  ;;  %v563_v49 = vrot.slane %v1731_v45, 2  ;;  %v605_v50 = vrot.slane %v1731_v45, 6  ;;  %v565_v59 = vrot.slane %v1734_v46, 2 }
 0x33a   :  { %v607_v0 = vrot.slane %v1734_v46, 6  ;;  %v586_v1 = vrot.slane %v1734_v46, 4  ;;  %v609_v9 = vrot.slane %v557_v2, 6  ;;  %v1307_v41 = vpack.c.bf16 %v879_v39, %v878_v38 }
 0x33b   :  { %v585_v54 = vsel %vm292_vm2, %v582_v42, %v584_v47  ;;  %v564_v56 = vsel %vm309_vm3, %v561_v44, %v563_v49  ;;  %v606_v60 = vsel %vm352_vm4, %v603_v52, %v605_v50  ;;  %v566_v63 = vsel %vm309_vm3, %v563_v49, %v565_v59  ;;  %v881_v42 = vld [vmem:[%s1977_s13 + $0x18] sm:$0xff]  ;;  %v882_v44 = vld [vmem:[%s1977_s13 + $0x20] sm:$0xff]  ;;  %v887_v52 = vld [vmem:[%s1977_s13 + $0x48] sm:$0xff] }
 0x33c   :  { %v1358_v57 = vpack.i.bf16 %v585_v54, %v583_v53  ;;  %v1353_v58 = vpack.i.bf16 %v564_v56, %v562_v55  ;;  %v1363_v62 = vpack.i.bf16 %v606_v60, %v604_v61  ;;  %v608_v3 = vsel %vm352_vm4, %v605_v50, %v607_v0  ;;  %1308 = vmatpush1.bf16.msra.mxu0 %v1307_v41  ;;  %v885_v49 = vld [vmem:[%s1977_s13 + $0x38] sm:$0xff]  ;;  %v888_v54 = vld [vmem:[%s1977_s13 + $0x50] sm:$0xff] }
 0x33d   :  { %v587_v4 = vsel %vm292_vm2, %v584_v47, %v586_v1  ;;  %v589_v7 = vsel %vm292_vm2, %v586_v1, %v588_v5  ;;  %v568_v8 = vsel %vm309_vm3, %v565_v59, %v567_v6  ;;  %v610_v10 = vsel %vm352_vm4, %v607_v0, %v609_v9  ;;  %1309 = vmatprep.subr.bf16.mxu0 %v1411_v48  ;;  %v884_v47 = vld [vmem:[%s1977_s13 + $0x30] sm:$0xff]  ;;  %v889_v55 = vld [vmem:[%s1977_s13 + $0x58] sm:$0xff] }
 0x33e   :  { %1359 = vrot.lane.b32.xlu1 %v1358_v57, %s1412_s9  ;;  %1354 = vrot.lane.b32.xlu0 %v1353_v58, %s1407_s27  ;;  %v1310_v43 = vpack.c.bf16 %v881_v42, %v880_v40  ;;  %v1316_v50 = vpack.c.bf16 %v885_v49, %v884_v47  ;;  %v1319_v53 = vpack.c.bf16 %v887_v52, %v886_v51  ;;  %v890_v57 = vld [vmem:[%s1977_s13 + $0x60] sm:$0xff]  ;;  %v891_v58 = vld [vmem:[%s1977_s13 + $0x68] sm:$0xff] }
 0x33f   :  { %v1322_v56 = vpack.c.bf16 %v889_v55, %v888_v54  ;;  %v1325_v59 = vpack.c.bf16 %v891_v58, %v890_v57  ;;  %v892_v60 = vld [vmem:[%s1977_s13 + $0x70] sm:$0xff]  ;;  %v893_v61 = vld [vmem:[%s1977_s13 + $0x78] sm:$0xff] }
 0x340   :  { %1311 = vmatpush1.bf16.msra.mxu0 %v1310_v43 }
 0x341   :  { %1312 = vmatprep.subr.bf16.mxu0 %v1411_v48 }
 0x342   :  { %573 = vrot.lane.b32.xlu1 %v566_v63, %s1407_s27  ;;  %1364 = vrot.lane.b32.xlu0 %v1363_v62, %s1413_s26  ;;  %v1328_v62 = vpack.c.bf16 %v893_v61, %v892_v60  ;;  %v1169_v63 = vld [vmem:[%s1974_s10] ss:$0 sm:$0xff] }
 0x346   :  { %615 = vrot.lane.b32.xlu1 %v608_v3, %s1413_s26  ;;  %594 = vrot.lane.b32.xlu0 %v587_v4, %s1412_s9  ;;  %v1174_v3 = vld [vmem:[%s1975_s11] ss:$0 sm:$0xff] }
 0x34a   :  { %596 = vrot.lane.b32.xlu1 %v589_v7, %s1412_s9  ;;  %575 = vrot.lane.b32.xlu0 %v568_v8, %s1407_s27  ;;  %v1175_v7 = vld [vmem:[%s1976_s12] ss:$0 sm:$0xff] }
 0x34e   :  { %617 = vrot.lane.b32.xlu0 %v610_v10, %s1413_s26 }
 0x3b0   :  { %v1360_v11 = vpop.permute.xlu1 %1359  ;;  %v1355_v12 = vpop.permute.xlu0 %1354 }
 0x3b1   :  { %v1356_v13 = vunpack.i.l.bf16 %v1355_v12  ;;  %v1361_v14 = vunpack.i.l.bf16 %v1360_v11  ;;  %v1357_v15 = vunpack.i.h.bf16 %v1355_v12  ;;  %v1362_v20 = vunpack.i.h.bf16 %v1360_v11 }
 0x3b3   :  { %v623_v16 = vsel %vm399_vm6, %v556_v33, %v1356_v13  ;;  %v624_v25 = vsel %vm399_vm6, %v1710_v22, %v1357_v15 }
 0x3b4   :  { %v574_v17 = vpop.permute.xlu1 %573  ;;  %v1365_v18 = vpop.permute.xlu0 %1364  ;;  %v628_v21 = vsel %vm627_vm8, %v623_v16, %v1361_v14  ;;  %v629_v28 = vsel %vm627_vm8, %v624_v25, %v1362_v20  ;;  %v894_v25 = vld [vmem:[%s1977_s13 + $0x80] sm:$0xff] }
 0x3b5   :  { %v1366_v19 = vunpack.i.l.bf16 %v1365_v18  ;;  %v1367_v23 = vunpack.i.h.bf16 %v1365_v18  ;;  %v625_v29 = vsel %vm399_vm6, %v1731_v45, %v574_v17 }
 0x3b7   :  { %v633_v24 = vsel %vm632_vm9, %v628_v21, %v1366_v19  ;;  %v634_v30 = vsel %vm632_vm9, %v629_v28, %v1367_v23 }
 0x3b8   :  { %v595_v26 = vpop.permute.xlu0 %594  ;;  %737 = vmatmul.mubr.f32.vlgmr.msra.gmra.mrb[4].mxu1 %v633_v24  ;;  %v616_v27 = vpop.permute.xlu1 %615 }
 0x3b9   :  { %1171 = vmatprep.mubr.msk.f32.mxu1 %vm399_vm6, %v1731_v45  ;;  %v630_v31 = vsel %vm627_vm8, %v625_v29, %v595_v26  ;;  %v883_v45 = vld [vmem:[%s1977_s13 + $0x28] sm:$0xff] }
 0x3ba   :  { %v635_v34 = vsel %vm632_vm9, %v630_v31, %v616_v27  ;;  %v895_v26 = vld [vmem:[%s1977_s13 + $0x88] sm:$0xff] }
 0x3bc   :  { %v576_v32 = vpop.permute.xlu0 %575  ;;  %742 = vmatmul.mubr.f32.gmra.mrb[6].mxu1 %v634_v30  ;;  %v597_v22 = vpop.permute.xlu1 %596  ;;  %v1331_v30 = vpack.c.bf16 %v895_v26, %v894_v25 }
 0x3bd   :  { %1172 = vmatprep.mubr.msk.f32.mxu1 %vm399_vm6, %v1734_v46  ;;  %v626_v33 = vsel %vm399_vm6, %v1734_v46, %v576_v32  ;;  %v1313_v46 = vpack.c.bf16 %v883_v45, %v882_v44  ;;  %v896_v32 = vld [vmem:[%s1977_s13 + $0x90] sm:$0xff] }
 0x3be   :  { %v631_v36 = vsel %vm627_vm8, %v626_v33, %v597_v22  ;;  %v897_v22 = vld [vmem:[%s1977_s13 + $0x98] sm:$0xff] }
 0x3bf   :  { %1314 = vmatpush1.bf16.msra.mxu0 %v1313_v46 }
 0x3c0   :  { %v618_v35 = vpop.permute.xlu0 %617  ;;  %747 = vmatmul.mubr.f32.gmra.mrb[8].mxu1 %v635_v34  ;;  %1315 = vmatprep.subr.bf16.mxu0 %v1411_v48 }
 0x3c1   :  { %1173 = vmatprep.mubr.msk.f32.mxu1 %vm399_vm6, %v557_v2  ;;  %v636_v37 = vsel %vm632_vm9, %v631_v36, %v618_v35  ;;  %v1334_v35 = vpack.c.bf16 %v897_v22, %v896_v32 }
 0x3c3   :  { %1317 = vmatpush1.bf16.msra.mxu0 %v1316_v50 }
 0x3c4   :  { %752 = vmatmul.mubr.f32.gmra.mrb[10].mxu1 %v636_v37  ;;  %1318 = vmatprep.subr.bf16.mxu0 %v1411_v48 }
 0x3c7   :  { %1320 = vmatpush1.bf16.msra.mxu0 %v1319_v53 }
 0x3c8   :  { %1321 = vmatprep.subr.bf16.mxu0 %v1411_v48 }
 0x3cb   :  { %1323 = vmatpush1.bf16.msra.mxu0 %v1322_v56 }
 0x3cc   :  { %1324 = vmatprep.subr.bf16.mxu0 %v1411_v48 }
 0x3cf   :  { %1326 = vmatpush1.bf16.msra.mxu0 %v1325_v59 }
 0x3d0   :  { %1327 = vmatprep.subr.bf16.mxu0 %v1411_v48 }
 0x3d3   :  { %1329 = vmatpush1.bf16.msra.mxu0 %v1328_v62 }
 0x3d4   :  { %1330 = vmatprep.subr.bf16.mxu0 %v1411_v48 }
 0x3d7   :  { %1332 = vmatpush1.bf16.msra.mxu0 %v1331_v30 }
 0x3d8   :  { %1333 = vmatprep.subr.bf16.mxu0 %v1411_v48 }
 0x3db   :  { %1335 = vmatpush1.bf16.msra.mxu0 %v1334_v35  ;;  %v1025_v35 = vld [vmem:[%s1981_s17 + $0x8] sm:$0xff] }
 0x48b   :  { %v738_v0 = vpop.f32.mrb[4].mxu1 }
 0x48c   :  { %v739_v1 = vadd.f32 %v1169_v63, %v738_v0  ;;  %v740_v2 = vpop.f32.mrb[5].mxu1 }
 0x48e   :  { %v757_v4 = vmax.f32 %v739_v1, 0.0 }
 0x48f   :  { %v743_v5 = vpop.f32.mrb[6].mxu1 }
 0x490   :  { %v768_v6 = vmul.f32 %v1174_v3, %v757_v4  ;;  %v744_v8 = vadd.f32 %v1169_v63, %v743_v5  ;;  %v745_v9 = vpop.f32.mrb[7].mxu1 }
 0x492   :  { %v758_v10 = vmax.f32 %v744_v8, 0.0  ;;  %v779_v11 = vadd.f32 %v1175_v7, %v768_v6 }
 0x493   :  { %v748_v12 = vpop.f32.mrb[8].mxu1 }
 0x494   :  { %v769_v13 = vmul.f32 %v1174_v3, %v758_v10  ;;  %v749_v14 = vadd.f32 %v1169_v63, %v748_v12  ;;  %v750_v15 = vpop.f32.mrb[9].mxu1  ;;  %v787_v18 = vrot.slane %v779_v11, 4 }
 0x496   :  { %v780_v16 = vadd.f32 %v1175_v7, %v769_v13  ;;  %v759_v17 = vmax.f32 %v749_v14, 0.0  ;;  %v799_v31 = vsel %vm292_vm2, 0.0, %v787_v18 }
 0x497   :  { %v753_v19 = vpop.f32.mrb[10].mxu1  ;;  %v824_v40 = vrot.slane %v799_v31, 4  ;;  %v803_v42 = vrot.slane %v799_v31, 2  ;;  %v845_v55 = vrot.slane %v799_v31, 6 }
 0x498   :  { %v788_v20 = vrot.slane %v780_v16, 4  ;;  %v770_v21 = vmul.f32 %v1174_v3, %v759_v17  ;;  %v754_v23 = vadd.f32 %v1169_v63, %v753_v19  ;;  %v755_v24 = vpop.f32.mrb[11].mxu1 }
 0x49a   :  { %v781_v27 = vadd.f32 %v1175_v7, %v770_v21  ;;  %v760_v28 = vmax.f32 %v754_v23, 0.0  ;;  %v1857_v29 = vsel %vm292_vm2, %v787_v18, %v788_v20 }
 0x49b   :  { %1177 = vmatprep.mubr.msk.f32.mxu0 %vm399_vm6, %v1857_v29  ;;  %v825_v36 = vrot.slane %v1857_v29, 4  ;;  %v804_v37 = vrot.slane %v1857_v29, 2  ;;  %v846_v46 = vrot.slane %v1857_v29, 6 }
 0x49c   :  { %v790_v33 = vrot.slane %v781_v27, 4  ;;  %v771_v34 = vmul.f32 %v1174_v3, %v760_v28 }
 0x49d   :  { %v826_v47 = vsel %vm292_vm2, %v824_v40, %v825_v36  ;;  %v805_v49 = vsel %vm309_vm3, %v803_v42, %v804_v37  ;;  %v847_v57 = vsel %vm352_vm4, %v845_v55, %v846_v46  ;;  %v1176_v40 = vld [vmem:[%s1995_s23] ss:$0 sm:$0xff] }
 0x49e   :  { %v1872_v38 = vsel %vm292_vm2, %v788_v20, %v790_v33  ;;  %v782_v39 = vadd.f32 %v1175_v7, %v771_v34  ;;  %v1024_v34 = vld [vmem:[%s1981_s17] sm:$0xff] }
 0x49f   :  { %v827_v41 = vrot.slane %v1872_v38, 4  ;;  %v806_v43 = vrot.slane %v1872_v38, 2  ;;  %v848_v44 = vrot.slane %v1872_v38, 6 }
 0x4a0   :  { %v792_v45 = vrot.slane %v782_v39, 4 }
 0x4a1   :  { %v828_v48 = vsel %vm292_vm2, %v825_v36, %v827_v41  ;;  %v807_v50 = vsel %vm309_vm3, %v804_v37, %v806_v43  ;;  %v849_v56 = vsel %vm352_vm4, %v846_v46, %v848_v44  ;;  %v1336_v36 = vpack.c.bf16 %v1025_v35, %v1024_v34  ;;  %v1026_v37 = vld [vmem:[%s1981_s17 + $0x10] sm:$0xff]  ;;  %v1182_v46 = vld [vmem:[%s1980_s16] ss:$0 sm:$0xff] }
 0x4a2   :  { %v793_v51 = vsel %vm292_vm2, %v790_v33, %v792_v45  ;;  %v1373_v52 = vpack.i.bf16 %v828_v48, %v826_v47  ;;  %v1368_v53 = vpack.i.bf16 %v807_v50, %v805_v49  ;;  %v1378_v58 = vpack.i.bf16 %v849_v56, %v847_v57 }
 0x4a3   :  { %v808_v54 = vrot.slane %v793_v51, 2  ;;  %v850_v60 = vrot.slane %v793_v51, 6  ;;  %v829_v61 = vrot.slane %v793_v51, 4  ;;  %v800_v62 = vsel %vm292_vm2, %v792_v45, 0.0  ;;  %1337 = vmatprep.subr.bf16.mxu1 %v1336_v36 }
 0x4a4   :  { %1374 = vrot.lane.b32.xlu0 %v1373_v52, %s1412_s9  ;;  %1369 = vrot.lane.b32.xlu1 %v1368_v53, %s1407_s27  ;;  %v831_v1 = vrot.slane %v800_v62, 4  ;;  %v810_v2 = vrot.slane %v800_v62, 2  ;;  %v852_v5 = vrot.slane %v800_v62, 6 }
 0x4a5   :  { %v809_v59 = vsel %vm309_vm3, %v806_v43, %v808_v54  ;;  %v851_v63 = vsel %vm352_vm4, %v848_v44, %v850_v60  ;;  %v830_v0 = vsel %vm292_vm2, %v827_v41, %v829_v61  ;;  %1339 = vmatpush3.bf16.msra.mxu1 %v1336_v36  ;;  %v1181_v44 = vld [vmem:[%s1979_s15] ss:$0 sm:$0xff] }
 0x4a6   :  { %v832_v3 = vsel %vm292_vm2, %v829_v61, %v831_v1  ;;  %v811_v4 = vsel %vm309_vm3, %v808_v54, %v810_v2  ;;  %v853_v6 = vsel %vm352_vm4, %v850_v60, %v852_v5 }
 0x4a8   :  { %816 = vrot.lane.b32.xlu0 %v809_v59, %s1407_s27  ;;  %1379 = vrot.lane.b32.xlu1 %v1378_v58, %s1413_s26 }
 0x4ac   :  { %858 = vrot.lane.b32.xlu0 %v851_v63, %s1413_s26  ;;  %837 = vrot.lane.b32.xlu1 %v830_v0, %s1412_s9 }
 0x4b0   :  { %839 = vrot.lane.b32.xlu0 %v832_v3, %s1412_s9  ;;  %818 = vrot.lane.b32.xlu1 %v811_v4, %s1407_s27  ;;  %v1183_v3 = vld [vmem:[%s1982_s18] ss:$0 sm:$0xff] }
 0x4b4   :  { %860 = vrot.lane.b32.xlu1 %v853_v6, %s1413_s26 }
 0x516   :  { %v1375_v7 = vpop.permute.xlu0 %1374  ;;  %v1370_v8 = vpop.permute.xlu1 %1369 }
 0x517   :  { %v1371_v9 = vunpack.i.l.bf16 %v1370_v8  ;;  %v1376_v10 = vunpack.i.l.bf16 %v1375_v7  ;;  %v1372_v11 = vunpack.i.h.bf16 %v1370_v8  ;;  %v1377_v16 = vunpack.i.h.bf16 %v1375_v7 }
 0x519   :  { %v866_v12 = vsel %vm399_vm6, %v799_v31, %v1371_v9  ;;  %v867_v20 = vsel %vm399_vm6, %v1857_v29, %v1372_v11 }
 0x51a   :  { %v817_v13 = vpop.permute.xlu0 %816  ;;  %v1380_v14 = vpop.permute.xlu1 %1379  ;;  %v870_v17 = vsel %vm627_vm8, %v866_v12, %v1376_v10  ;;  %v871_v24 = vsel %vm627_vm8, %v867_v20, %v1377_v16 }
 0x51b   :  { %v1381_v15 = vunpack.i.l.bf16 %v1380_v14  ;;  %v1382_v18 = vunpack.i.h.bf16 %v1380_v14  ;;  %v868_v25 = vsel %vm399_vm6, %v1872_v38, %v817_v13 }
 0x51d   :  { %v874_v19 = vsel %vm632_vm9, %v870_v17, %v1381_v15  ;;  %v875_v26 = vsel %vm632_vm9, %v871_v24, %v1382_v18 }
 0x51e   :  { %v838_v21 = vpop.permute.xlu1 %837  ;;  %978 = vmatmul.mubr.f32.vlgmr.msra.gmra.mrb[8].mxu0 %v874_v19  ;;  %v859_v23 = vpop.permute.xlu0 %858 }
 0x51f   :  { %1178 = vmatprep.mubr.msk.f32.mxu0 %vm399_vm6, %v1872_v38  ;;  %v872_v27 = vsel %vm627_vm8, %v868_v25, %v838_v21  ;;  %v1027_v38 = vld [vmem:[%s1981_s17 + $0x18] sm:$0xff]  ;;  %s1414_s17 = smov [#allocation2]  }
 0x520   :  { %v876_v31 = vsel %vm632_vm9, %v872_v27, %v859_v23  ;;  %v1340_v39 = vpack.c.bf16 %v1027_v38, %v1026_v37  ;;  %s1141_s28 = sshll.u32 %s1414_s17, 4  ;;  %s1142_s28 = int_to_ptr.vmem [resolvable:$true] %s1141_s28 }
 0x521   :  { %s1383_s18 = scalar_lea.vmem %s1142_s28, 512  ;;  %p1388_p1 = scmp.lt.s32.totalorder %s1142_s28, %s1142_s28 }
 0x522   :  { %v819_v28 = vpop.permute.xlu1 %818  ;;  %983 = vmatmul.mubr.f32.gmra.mrb[10].mxu0 %v875_v26  ;;  %v840_v29 = vpop.permute.xlu0 %839  ;;  %1341 = vmatprep.subr.bf16.mxu1 %v1340_v39  ;;  %p1384_p0 = scmp.ne.s32.totalorder %s1142_s28, %s1383_s18  ;;  %p1389_p2 = scmp.lt.s32.totalorder %s1383_s18, %s1383_s18 }
 0x523   :  { %1179 = vmatprep.mubr.msk.f32.mxu0 %vm399_vm6, %v793_v51  ;;  %v869_v30 = vsel %vm399_vm6, %v793_v51, %v819_v28  ;;  %1343 = vmatpush3.bf16.msra.mxu1 %v1340_v39 }
 0x524   :  { %v873_v22 = vsel %vm627_vm8, %v869_v30, %v840_v29  ;;  %p1390_p3 = por %p1389_p2, %p1388_p1 }
 0x526   :  { %v861_v32 = vpop.permute.xlu1 %860  ;;  %988 = vmatmul.mubr.f32.gmra.mrb[12].mxu0 %v876_v31  ;;  %p1391_p4 = pnand %p1390_p3, %p1384_p0 }
 0x527   :  { %1180 = vmatprep.mubr.msk.f32.mxu0 %vm399_vm6, %v800_v62  ;;  %v877_v33 = vsel %vm632_vm9, %v873_v22, %v861_v32 }
 0x52a   :  { %993 = vmatmul.mubr.f32.gmra.mrb[14].mxu0 %v877_v33 }
 0x5f1   :  { %v979_v41 = vpop.f32.mrb[8].mxu0 }
 0x5f2   :  { %v980_v42 = vadd.f32 %v1176_v40, %v979_v41  ;;  %v981_v43 = vpop.f32.mrb[9].mxu0 }
 0x5f4   :  { %v998_v45 = vmax.f32 %v980_v42, 0.0 }
 0x5f5   :  { %v984_v47 = vpop.f32.mrb[10].mxu0 }
 0x5f6   :  { %v1009_v48 = vmul.f32 %v1181_v44, %v998_v45  ;;  %v985_v49 = vadd.f32 %v1176_v40, %v984_v47  ;;  %v986_v50 = vpop.f32.mrb[11].mxu0 }
 0x5f8   :  { %v1020_v51 = vadd.f32 %v1182_v46, %v1009_v48  ;;  %v999_v52 = vmax.f32 %v985_v49, 0.0 }
 0x5f9   :  { %v989_v53 = vpop.f32.mrb[12].mxu0 }
 0x5fa   :  { %v1010_v54 = vmul.f32 %v1181_v44, %v999_v52  ;;  %v990_v55 = vadd.f32 %v1176_v40, %v989_v53  ;;  %v991_v56 = vpop.f32.mrb[13].mxu0  ;;  %1258 = vmatprep.mubr.msk.f32.mxu1 %vm399_vm6, %v1020_v51 }
 0x5fc   :  { %v1021_v57 = vadd.f32 %v1182_v46, %v1010_v54  ;;  %v1000_v58 = vmax.f32 %v990_v55, 0.0 }
 0x5fd   :  { %v994_v59 = vpop.f32.mrb[14].mxu0 }
 0x5fe   :  { %v1011_v60 = vmul.f32 %v1181_v44, %v1000_v58  ;;  %v995_v61 = vadd.f32 %v1176_v40, %v994_v59  ;;  %v996_v62 = vpop.f32.mrb[15].mxu0  ;;  %1259 = vmatmul.mubr.msk.f32.vlgmr.msra.gmra.mrb[12].mxu1 %vm399_vm6, %v1021_v57 }
 0x600   :  { %v1022_v63 = vadd.f32 %v1182_v46, %v1011_v60  ;;  %v1001_v0 = vmax.f32 %v995_v61, 0.0 }
 0x602   :  { %v1012_v1 = vmul.f32 %v1181_v44, %v1001_v0  ;;  %1261 = vmatprep.mubr.msk.f32.mxu1 %vm399_vm6, %v1022_v63 }
 0x604   :  { %v1023_v2 = vadd.f32 %v1182_v46, %v1012_v1 }
 0x606   :  { %1262 = vmatmul.mubr.msk.f32.gmra.mrb[14].mxu1 %vm399_vm6, %v1023_v2 }
 0x6d1   :  { %v1260_v4 = vpop.f32.mrb[12].mxu1 }
 0x6d2   :  { %v1119_v5 = vadd.f32 %v1260_v4, %v1183_v3  ;;  %v1113_v6 = vpop.f32.mrb[13].mxu1 }
 0x6d3   :  { %v1114_v7 = vadd.f32 %v1183_v3, %v1113_v6 }
 0x6d4   :  { %1133 = vst.msk [vmem:[#allocation2 + $0x8] sm:$0xff] %vm399_vm6, %v1119_v5 }
 0x6d5   :  { %1132 = vst.msk [vmem:[#allocation2] sm:$0xff] %vm399_vm6, %v1114_v7 }
 0x6d9   :  { %v1263_v8 = vpop.f32.mrb[14].mxu1 }
 0x6da   :  { %v1129_v9 = vadd.f32 %v1263_v8, %v1183_v3  ;;  %v1123_v10 = vpop.f32.mrb[15].mxu1 }
 0x6db   :  { %v1124_v11 = vadd.f32 %v1183_v3, %v1123_v10 }
 0x6dc   :  { %1135 = vst.msk [vmem:[#allocation2 + $0x18] sm:$0xff] %vm399_vm6, %v1129_v9 }
 0x6dd   :  { %1134 = vst.msk [vmem:[#allocation2 + $0x10] sm:$0xff] %vm399_vm6, %v1124_v11 }
 0x6de   :  { %1394 = shalt.err (!%p1391_p4)
}
 0x6df   :  { %s1395_s11 = scalar_lea.hbm %s1983_s19, 512 }
 0x6e0   :  { %p1396_p5 = scmp.ne.s32.totalorder %s1983_s19, %s1395_s11  ;;  %p1399_p6 = scmp.lt.u32.totalorder %s1395_s11, %s1983_s19 }
 0x6e2   :  { %p1401_p7 = pnand %p1399_p6, %p1396_p5 }
 0x6e4   :  { %1404 = shalt.err (!%p1401_p7)
}
 0x6e5   :  { %s1415_s21 = smov 128  }
 0x6e6   :  { %1147 = dma.vmem_to_hbm [thread:$0]  %s1142_s28, 512, %s1983_s19, [#allocation3], %s1415_s21, %s1415_s21, %s1409_s29  }
 0x6e7   :  { %1405 = dma.done.wait [#allocation3], 512  }
 0x6e8   :  { %1406 = vsyncadd [#allocation3], 4294966784 }
 0x6e9   :  { %1151 = vsyncpa [#allocation3], 1 }

</bundles_post_ra>
